<compile_context>
chip_gen: v7x
topology: tpu7x:2x2x1
jax: 0.10.0
libtpu: 0.0.40
codegen_flags: <defaults>
</compile_context>

<pallas_src>
import functools

import jax
import jax.numpy as jnp
from jax.experimental import pallas as pl
from jax.experimental.pallas import tpu as pltpu


def _round_up(v, m):
    return (v + m - 1) // m * m


def _conv_min_conv_max_kernel(params_ref, x_ref, o_ref, *, H, W):
    """Pass 1 (gridded over the batch): per-sample conv1 -> min_W -> conv2 -> max_H scalar.

    params_ref: SMEM f32[16]
      [0:4] conv1 weight (2x2 row-major)  [4] conv1 bias
      [5:9] conv2 weight (2x2 row-major)  [9] conv2 bias
      [10]  bn gamma  [11] bn beta  [12] bn eps  [13:16] unused
    x_ref: VMEM (BLK_N, H_pad, W_pad), zero-padded beyond (H, W)
    o_ref: VMEM f32 (1, 1, BLK_N) -- lane-dense per-sample maxima for this batch block
    """
    x = x_ref[...]
    if x.dtype != jnp.float32:
        x = x.astype(jnp.float32)            # cast in-kernel; keeps HBM traffic narrow for bf16
    blk_n, h_pad, w_pad = x.shape

    w1_00 = params_ref[0]
    w1_01 = params_ref[1]
    w1_10 = params_ref[2]
    w1_11 = params_ref[3]
    b1 = params_ref[4]
    w2_00 = params_ref[5]
    w2_10 = params_ref[7]
    b2 = params_ref[9]
    # conv1 bias folded through the width-min into conv2's bias:
    #   min_j(taps + b1) = min_j(taps) + b1  =>  b2' = b2 + b1 * (w2_00 + w2_10)
    b2_eff = b2 + b1 * (w2_00 + w2_10)

    # ---- conv1: Conv2d(1, 1, 2), valid ---- shifted copies via full-tile XLU rolls
    x_r = pltpu.roll(x, shift=w_pad - 1, axis=2)         # x[n, i, j+1]  (wrapped; masked below)
    top = w1_00 * x + w1_01 * x_r                        # row-i contribution
    bot = w1_10 * x + w1_11 * x_r                        # row-(i+1) contribution
    y1 = top + pltpu.roll(bot, shift=h_pad - 1, axis=1)  # conv1 output (bias folded out)

    # ---- torch.min(x1, dim=3): mask wrapped/padded columns with +inf (mask is (1,1,W_pad)) ----
    col = jax.lax.broadcasted_iota(jnp.int32, (1, 1, w_pad), 2)
    m1 = jnp.min(jnp.where(col < (W - 1), y1, jnp.inf), axis=2, keepdims=True)  # (BLK_N, H_pad, 1)

    # conv2's second tap from the *reduced* tile (min-then-roll == roll-then-min)
    m1_dn = pltpu.roll(m1, shift=h_pad - 1, axis=1)      # m1[n, i+1]  (wrapped; masked below)

    # ---- conv2: zero-padded-width semantics, only kernel column 0 contributes (see TODO) ----
    y2 = w2_00 * m1 + w2_10 * m1_dn + b2_eff             # (BLK_N, H_pad, 1), valid rows i <= H-3

    # ---- torch.max(x2, dim=2): mask invalid rows with -inf (mask is (1,H_pad,1)) ----
    row = jax.lax.broadcasted_iota(jnp.int32, (1, h_pad, 1), 1)
    m2 = jnp.max(jnp.where(row < (H - 2), y2, -jnp.inf), axis=1)   # (BLK_N, 1)

    # ---- lay the BLK_N per-sample scalars on the lane axis: (BLK_N,1) -> (1,BLK_N) ----
    # per-block diagonal select: O(BLK_N) per sample (tiny), keeps the output lane-dense
    r = jax.lax.broadcasted_iota(jnp.int32, (blk_n, blk_n), 0)
    c = jax.lax.broadcasted_iota(jnp.int32, (blk_n, blk_n), 1)
    m2_row = jnp.sum(jnp.where(r == c, m2, 0.0), axis=0, keepdims=True)   # (1, BLK_N)
    o_ref[...] = m2_row.reshape(1, 1, blk_n)


def _batchnorm_kernel(params_ref, v_ref, o_ref, *, N):
    """Pass 2: BatchNorm2d(1), training mode, over the N per-sample values."""
    v = v_ref[...]                                       # (G, 1, BLK_N)
    _, _, blk_n = v.shape
    gamma = params_ref[10]
    beta = params_ref[11]
    eps = params_ref[12]

    g_idx = jax.lax.broadcasted_iota(jnp.int32, v.shape, 0)
    l_idx = jax.lax.broadcasted_iota(jnp.int32, v.shape, 2)
    valid = (g_idx * blk_n + l_idx) < N                  # mask out batch padding

    inv_n = 1.0 / N
    mu = jnp.sum(jnp.where(valid, v, 0.0)) * inv_n
    d = v - mu
    var = jnp.sum(jnp.where(valid, d * d, 0.0)) * inv_n  # biased batch variance
    o_ref[...] = gamma * d * jax.lax.rsqrt(var + eps) + beta


def _pick_block_n(n, h_pad, w_pad):
    """Largest power-of-two batch block whose in-kernel working set stays VMEM-safe on every
    generation (v7x has 64 MiB physical / 32 MiB default scoped VMEM; halve vs v5e/v6e)."""
    per_sample_bytes = h_pad * w_pad * 4
    budget = 8 << 20               # block * ~4 live f32 temps * 2 (double buffering) <= ~8 MiB
    blk = 8
    n_ceil = _round_up(max(n, 1), 8)
    while blk * 2 <= n_ceil and blk * 2 * per_sample_bytes * 6 <= budget:
        blk *= 2
    return blk


def model_forward(x_nchw, params):
    N, C, H, W = x_nchw.shape
    assert C == 1, "module is single-channel"
    assert H >= 3 and W >= 2, "forward requires H >= 3 and W >= 2"

    x = x_nchw[:, 0, :, :]

    # One host-side pad: H to a sublane multiple, W to a lane multiple (aligned full-tile rolls),
    # N up to the batch block. Padding is masked out inside the kernel; dtype is preserved.
    h_pad = _round_up(H, 8)
    w_pad = _round_up(W, 128)
    blk_n = _pick_block_n(N, h_pad, w_pad)
    n_pad = _round_up(N, blk_n)
    if (n_pad, h_pad, w_pad) != (N, H, W):
        x = jnp.pad(x, ((0, n_pad - N), (0, h_pad - H), (0, w_pad - W)))
    grid_n = n_pad // blk_n

    # ---- pass 1: per-sample reduced scalar, gridded over the batch (megacore-parallel) ----
    maxv = pl.pallas_call(
        functools.partial(_conv_min_conv_max_kernel, H=H, W=W),
        out_shape=jax.ShapeDtypeStruct((grid_n, 1, blk_n), jnp.float32),
        grid=(grid_n,),
        in_specs=[
            pl.BlockSpec(memory_space=pltpu.MemorySpace.SMEM),            # params (scalars)
            pl.BlockSpec((blk_n, h_pad, w_pad), lambda g: (g, 0, 0)),     # batch block of x
        ],
        out_specs=pl.BlockSpec((1, 1, blk_n), lambda g: (g, 0, 0)),       # lane-dense maxima
        compiler_params=pltpu.CompilerParams(
            dimension_semantics=("parallel",),
            vmem_limit_bytes=32 * 1024 * 1024,
        ),
    )(params, x)

    # ---- pass 2: BatchNorm needs global batch statistics -> tiny second call ----
    y = pl.pallas_call(
        functools.partial(_batchnorm_kernel, N=N),
        out_shape=jax.ShapeDtypeStruct((grid_n, 1, blk_n), jnp.float32),
        in_specs=[
            pl.BlockSpec(memory_space=pltpu.MemorySpace.SMEM),
            pl.BlockSpec(memory_space=pltpu.MemorySpace.VMEM),
        ],
        out_specs=pl.BlockSpec(memory_space=pltpu.MemorySpace.VMEM),
    )(params, maxv)

    # match PyTorch output layout (N, C=1, H'=1, W'=1)
    return y.reshape(-1)[:N].reshape(N, 1, 1, 1)


def ref_forward(x_nchw, params):
    """Pure-jnp reference of the same (zero-padded-width conv2) semantics."""
    p = params
    x = x_nchw[:, 0].astype(jnp.float32)
    y1 = (p[0] * x[:, :-1, :-1] + p[1] * x[:, :-1, 1:]
          + p[2] * x[:, 1:, :-1] + p[3] * x[:, 1:, 1:]) + p[4]
    m1 = jnp.min(y1, axis=2, keepdims=True)
    y2 = p[5] * m1[:, :-1, :] + p[7] * m1[:, 1:, :] + p[9]
    m2 = jnp.max(y2, axis=1, keepdims=True)
    mu = jnp.mean(m2)
    var = jnp.mean((m2 - mu) ** 2)
    y = p[10] * (m2 - mu) * jax.lax.rsqrt(var + p[12]) + p[11]
    return y.reshape(x.shape[0], 1, 1, 1)


if __name__ == "__main__":
    key = jax.random.PRNGKey(0)
    k_x, k_w1, k_b1, k_w2, k_b2 = jax.random.split(key, 5)

    # small input consistent with the module (N, C=1, H, W); forward needs H >= 3, W >= 2
    x = jax.random.normal(k_x, (2, 1, 8, 8), dtype=jnp.float32)

    # deterministic PyTorch-style uniform +-1/sqrt(fan_in) init, fan_in = 1*2*2
    bound = 0.5
    w1 = jax.random.uniform(k_w1, (4,), minval=-bound, maxval=bound)
    b1 = jax.random.uniform(k_b1, (1,), minval=-bound, maxval=bound)
    w2 = jax.random.uniform(k_w2, (4,), minval=-bound, maxval=bound)
    b2 = jax.random.uniform(k_b2, (1,), minval=-bound, maxval=bound)
    gamma = jnp.ones((1,), jnp.float32)
    beta = jnp.zeros((1,), jnp.float32)
    eps = jnp.full((1,), 1e-5, jnp.float32)
    pad = jnp.zeros((3,), jnp.float32)
    params = jnp.concatenate([w1, b1, w2, b2, gamma, beta, eps, pad]).astype(jnp.float32)

    y = model_forward(x, params)
    jax.block_until_ready(y)

    y_ref = ref_forward(x, params)
    assert y.shape == (2, 1, 1, 1)
    assert jnp.allclose(y, y_ref, atol=1e-4, rtol=1e-4), (y, y_ref)

    print("KERNEL_OK")
</pallas_src>

<mosaic_0001>
module attributes {stable_mosaic.version = 11 : i64} {
  func.func @_conv_min_conv_max_kernel(%arg0: i32, %arg1: memref<16xf32, #tpu.memory_space<smem>>, %arg2: memref<8x8x128xf32, #tpu.memory_space<vmem>>, %arg3: memref<1x1x8xf32, #tpu.memory_space<vmem>>) attributes {dimension_semantics = [#tpu.dimension_semantics<parallel>], iteration_bounds = array<i64: 1>, scalar_prefetch = 0 : i64, scratch_operands = 0 : i64, tpu.core_type = #tpu.core_type<tc>, window_params = [{transform_indices = @transform_0, window_bounds = array<i64: 16>}, {transform_indices = @transform_1, window_bounds = array<i64: 8, 8, 128>}, {transform_indices = @transform_2, window_bounds = array<i64: 1, 1, 8>}]} {
    %c0 = arith.constant 0 : index
    %c0_0 = arith.constant 0 : index
    %c0_1 = arith.constant 0 : index
    %0 = vector.load %arg2[%c0, %c0_0, %c0_1] : memref<8x8x128xf32, #tpu.memory_space<vmem>>, vector<8x8x128xf32>
    %c0_2 = arith.constant 0 : index
    %1 = memref.load %arg1[%c0_2] : memref<16xf32, #tpu.memory_space<smem>>
    %c1 = arith.constant 1 : index
    %2 = memref.load %arg1[%c1] : memref<16xf32, #tpu.memory_space<smem>>
    %c2 = arith.constant 2 : index
    %3 = memref.load %arg1[%c2] : memref<16xf32, #tpu.memory_space<smem>>
    %c3 = arith.constant 3 : index
    %4 = memref.load %arg1[%c3] : memref<16xf32, #tpu.memory_space<smem>>
    %c4 = arith.constant 4 : index
    %5 = memref.load %arg1[%c4] : memref<16xf32, #tpu.memory_space<smem>>
    %c5 = arith.constant 5 : index
    %6 = memref.load %arg1[%c5] : memref<16xf32, #tpu.memory_space<smem>>
    %c7 = arith.constant 7 : index
    %7 = memref.load %arg1[%c7] : memref<16xf32, #tpu.memory_space<smem>>
    %c9 = arith.constant 9 : index
    %8 = memref.load %arg1[%c9] : memref<16xf32, #tpu.memory_space<smem>>
    %9 = arith.addf %6, %7 : f32
    %10 = arith.mulf %5, %9 : f32
    %11 = arith.addf %8, %10 : f32
    %c127_i32 = arith.constant 127 : i32
    %12 = tpu.dynamic_rotate %0 by %c127_i32 dim 2 : vector<8x8x128xf32>, i32 -> vector<8x8x128xf32>
    %13 = vector.broadcast %1 : f32 to vector<8x8x128xf32>
    %14 = arith.mulf %13, %0 : vector<8x8x128xf32>
    %15 = vector.broadcast %2 : f32 to vector<8x8x128xf32>
    %16 = arith.mulf %15, %12 : vector<8x8x128xf32>
    %17 = arith.addf %14, %16 : vector<8x8x128xf32>
    %18 = vector.broadcast %3 : f32 to vector<8x8x128xf32>
    %19 = arith.mulf %18, %0 : vector<8x8x128xf32>
    %20 = vector.broadcast %4 : f32 to vector<8x8x128xf32>
    %21 = arith.mulf %20, %12 : vector<8x8x128xf32>
    %22 = arith.addf %19, %21 : vector<8x8x128xf32>
    %c7_i32 = arith.constant 7 : i32
    %23 = tpu.dynamic_rotate %22 by %c7_i32 dim 1 : vector<8x8x128xf32>, i32 -> vector<8x8x128xf32>
    %24 = arith.addf %17, %23 : vector<8x8x128xf32>
    %25 = tpu.iota {dimensions = array<i32: 2>} : vector<1x1x128xi32>
    %c7_i32_3 = arith.constant 7 : i32
    %26 = vector.broadcast %c7_i32_3 : i32 to vector<1x1x128xi32>
    %27 = arith.cmpi slt, %25, %26 : vector<1x1x128xi32>
    %cst = arith.constant 0x7F800000 : f32
    %28 = vector.shape_cast %27 : vector<1x1x128xi1> to vector<1x1x128xi1>
    %29 = vector.broadcast %28 : vector<1x1x128xi1> to vector<8x8x128xi1>
    %30 = vector.broadcast %cst : f32 to vector<8x8x128xf32>
    %31 = arith.select %29, %24, %30 : vector<8x8x128xi1>, vector<8x8x128xf32>
    %cst_4 = arith.constant dense<0x7F800000> : vector<8x8xf32>
    %32 = vector.multi_reduction <minimumf>, %31, %cst_4 [2] : vector<8x8x128xf32> to vector<8x8xf32>
    %33 = vector.shape_cast %32 : vector<8x8xf32> to vector<8x8x1xf32>
    %c7_i32_5 = arith.constant 7 : i32
    %34 = tpu.dynamic_rotate %33 by %c7_i32_5 dim 1 : vector<8x8x1xf32>, i32 -> vector<8x8x1xf32>
    %35 = vector.broadcast %6 : f32 to vector<8x8x1xf32>
    %36 = arith.mulf %35, %33 : vector<8x8x1xf32>
    %37 = vector.broadcast %7 : f32 to vector<8x8x1xf32>
    %38 = arith.mulf %37, %34 : vector<8x8x1xf32>
    %39 = arith.addf %36, %38 : vector<8x8x1xf32>
    %40 = vector.broadcast %11 : f32 to vector<8x8x1xf32>
    %41 = arith.addf %39, %40 : vector<8x8x1xf32>
    %42 = tpu.iota {dimensions = array<i32: 1>} : vector<1x8x1xi32>
    %c6_i32 = arith.constant 6 : i32
    %43 = vector.broadcast %c6_i32 : i32 to vector<1x8x1xi32>
    %44 = arith.cmpi slt, %42, %43 : vector<1x8x1xi32>
    %cst_6 = arith.constant 0xFF800000 : f32
    %45 = vector.shape_cast %44 : vector<1x8x1xi1> to vector<1x8x1xi1>
    %46 = vector.broadcast %45 : vector<1x8x1xi1> to vector<8x8x1xi1>
    %47 = vector.broadcast %cst_6 : f32 to vector<8x8x1xf32>
    %48 = arith.select %46, %41, %47 : vector<8x8x1xi1>, vector<8x8x1xf32>
    %cst_7 = arith.constant dense<0xFF800000> : vector<8x1xf32>
    %49 = vector.multi_reduction <maximumf>, %48, %cst_7 [1] : vector<8x8x1xf32> to vector<8x1xf32>
    %50 = tpu.iota {dimensions = array<i32: 0>} : vector<8x8xi32>
    %51 = tpu.iota {dimensions = array<i32: 1>} : vector<8x8xi32>
    %52 = arith.cmpi eq, %50, %51 : vector<8x8xi32>
    %cst_8 = arith.constant 0.000000e+00 : f32
    %53 = vector.shape_cast %49 : vector<8x1xf32> to vector<8x1xf32>
    %54 = vector.broadcast %53 : vector<8x1xf32> to vector<8x8xf32>
    %55 = vector.broadcast %cst_8 : f32 to vector<8x8xf32>
    %56 = arith.select %52, %54, %55 : vector<8x8xi1>, vector<8x8xf32>
    %cst_9 = arith.constant dense<0.000000e+00> : vector<8xf32>
    %57 = vector.multi_reduction <add>, %56, %cst_9 [0] : vector<8x8xf32> to vector<8xf32>
    %58 = vector.shape_cast %57 : vector<8xf32> to vector<1x8xf32>
    %59 = vector.shape_cast %58 : vector<1x8xf32> to vector<1x1x8xf32>
    %c0_10 = arith.constant 0 : index
    %c0_11 = arith.constant 0 : index
    %c0_12 = arith.constant 0 : index
    %60 = vector.load %arg3[%c0_10, %c0_11, %c0_12] : memref<1x1x8xf32, #tpu.memory_space<vmem>>, vector<1x1x8xf32>
    tpu.vector_store %arg3[%c0_10, %c0_11, %c0_12], %59 {strides = array<i32>} : memref<1x1x8xf32, #tpu.memory_space<vmem>>, vector<1x1x8xf32>,
    return
  }
  func.func @transform_0(%arg0: i32) -> i32 {
    %c0_i32 = arith.constant 0 : i32
    %c0_i32_0 = arith.constant 0 : i32
    return %c0_i32 : i32
  }
  func.func @transform_1(%arg0: i32) -> (i32, i32, i32) {
    %c0_i32 = arith.constant 0 : i32
    %c0_i32_0 = arith.constant 0 : i32
    %c0_i32_1 = arith.constant 0 : i32
    return %arg0, %c0_i32, %c0_i32_0 : i32, i32, i32
  }
  func.func @transform_2(%arg0: i32) -> (i32, i32, i32) {
    %c0_i32 = arith.constant 0 : i32
    %c0_i32_0 = arith.constant 0 : i32
    %c0_i32_1 = arith.constant 0 : i32
    return %arg0, %c0_i32, %c0_i32_0 : i32, i32, i32
  }
}

</mosaic_0001>

<bundles_post_ra>
// kernel: tpu_custom_call.1
= control target key start
LH: loop header
LB: loop body
LE: loop exit
PB: predicated region body
PF: predicated region fallthrough
CT: control target
= control target key end

     0   :  { %7 = vsyncpa [#allocation5], 0  ;;  %s586_s0 = inlined_call_operand.hbm [shape: f32[16], index: 0, kind: input, shape index: {}]   ;;  %s587_s1 = inlined_call_operand.hbm [shape: f32[8,8,128], index: 1, kind: input, shape index: {}]   ;;  %s588_s2 = inlined_call_operand.hbm [shape: f32[1,1,8], index: 2, kind: output, shape index: {}]  }
   0x1   :  { %8 = vsyncpa [#allocation3], 0 }
   0x2   :  { %9 = vsyncpa [#allocation4], 0  ;;  %s373_s11 = scalar_lea.hbm %s586_s0, 16 }
   0x3   :  { %p374_p0 = scmp.ne.s32.totalorder %s586_s0, %s373_s11  ;;  %p377_p1 = scmp.lt.u32.totalorder %s373_s11, %s586_s0 }
   0x5   :  { %p379_p2 = pnand %p377_p1, %p374_p0 }
   0x7   :  { %382 = shalt.err (!%p379_p2)
}
   0x8   :  { %s433_s16 = smov [#allocation2]   ;;  %s434_s19 = smov [#allocation6]  }
   0x9   :  { %17 = dma.hbm_to_smem %s586_s0, 16, %s433_s16, [#allocation5]  }
   0xa   :  { %s23_s20 = sshll.u32 %s434_s19, 4  ;;  %s383_s23 = scalar_lea.hbm %s587_s1, 1024  ;;  %s24_s20 = int_to_ptr.vmem [resolvable:$true] %s23_s20 }
   0xb   :  { %p384_p3 = scmp.ne.s32.totalorder %s587_s1, %s383_s23  ;;  %p387_p4 = scmp.lt.u32.totalorder %s383_s23, %s587_s1 }
   0xd   :  { %p389_p5 = pnand %p387_p4, %p384_p3 }
   0xf   :  { %392 = shalt.err (!%p389_p5)
}
  0x10   :  { %s393_s28 = scalar_lea.vmem %s24_s20, 1024  ;;  %p398_p7 = scmp.lt.s32.totalorder %s24_s20, %s24_s20 }
  0x11   :  { %p394_p6 = scmp.ne.s32.totalorder %s24_s20, %s393_s28  ;;  %p399_p8 = scmp.lt.s32.totalorder %s393_s28, %s393_s28 }
  0x13   :  { %p400_p9 = por %p399_p8, %p398_p7 }
  0x15   :  { %p401_p10 = pnand %p400_p9, %p394_p6 }
  0x17   :  { %404 = shalt.err (!%p401_p10)
}
  0x18   :  { %s435_s0 = smov 128   ;;  %s436_s29 = smov 8  }
  0x19   :  { %29 = dma.hbm_to_vmem [thread:$0]  %s587_s1, 1024, %s24_s20, [#allocation3], %s435_s0, %s435_s0, %s436_s29  }
  0x1a   :  { %427 = dma.done.wait [#allocation5], 16  }
  0x1b   :  { %428 = vsyncadd [#allocation5], 4294967280 }
  0x1c   :  { %429 = dma.done.wait [#allocation3], 1024  }
  0x1d   :  { %430 = vsyncadd [#allocation3], 4294966272 }
  0x1e   :  { %36 = sfence }
  0x1f   :  { %v37_v0 = vld [vmem:[#allocation6] sm:$0xff]  ;;  %v39_v1 = vld [vmem:[#allocation6 + $0x10] sm:$0xff]  ;;  %s437_s4 = smov 127   ;;  %v38_v2 = vld [vmem:[#allocation6 + $0x8] sm:$0xff]  ;;  %s358_s1 = sld [smem:[#allocation2 + $0x2]]  ;;  %v140_v8 = vlaneseq  ;;  %vm225_vm2 = vcmask 7168  }
  0x20   :  { %56 = vrot.lane.b32.xlu0 %v37_v0, %s437_s4  ;;  %60 = vrot.lane.b32.xlu1 %v39_v1, %s437_s4  ;;  %v40_v3 = vld [vmem:[#allocation6 + $0x18] sm:$0xff]  ;;  %v41_v4 = vld [vmem:[#allocation6 + $0x20] sm:$0xff]  ;;  %v42_v5 = vld [vmem:[#allocation6 + $0x28] sm:$0xff]  ;;  %s45_s5 = sld [smem:[#allocation2]]  ;;  %s357_s6 = sld [smem:[#allocation2 + $0x1]]  ;;  %vm315_vm3 = vcmask 1041409  }
  0x21   :  { %v43_v6 = vld [vmem:[#allocation6 + $0x30] sm:$0xff]  ;;  %v479_v7 = vld [vmem:[#allocation6 + $0x38] sm:$0xff]  ;;  %s359_s7 = sld [smem:[#allocation2 + $0x3]]  ;;  %v487_v13 = vand.u32 127, %v140_v8  ;;  %s361_s8 = sld [smem:[#allocation2 + $0x5]]  ;;  %vm317_vm4 = vcmask 1042434  }
  0x22   :  { %s362_s9 = sld [smem:[#allocation2 + $0x7]]  ;;  %s360_s10 = sld [smem:[#allocation2 + $0x4]]  ;;  %vm319_vm5 = vcmask 1043459   ;;  %vm321_vm6 = vcmask 1044484   ;;  %vm323_vm7 = vcmask 1045509   ;;  %vm325_vm8 = vcmask 1046534  }
  0x23   :  { %vm142_vm0 = vcmp.lt.s32.totalorder %v487_v13, 7  ;;  %s363_s11 = sld [smem:[#allocation2 + $0x9]]  ;;  %vm327_vm9 = vcmask 1047559   ;;  %vm331_vm11 = vcmask 64512   ;;  %s439_s15 = smov [#allocation7]   ;;  %vm339_vm12 = vcmask 57344  }
  0x24   :  { %58 = vrot.lane.b32.xlu0 %v38_v2, %s437_s4  ;;  %62 = vrot.lane.b32.xlu1 %v40_v3, %s437_s4  ;;  %s347_s16 = sshll.u32 %s439_s15, 4  ;;  %s348_s16 = int_to_ptr.vmem [resolvable:$true] %s347_s16 }
  0x25   :  { %v98_v9 = vstv %s358_s1  ;;  %s405_s17 = scalar_lea.vmem %s348_s16, 16  ;;  %s409_s18 = scalar_lea.vmem %s348_s16, 32 }
  0x26   :  { %v72_v10 = vstv %s45_s5  ;;  %v482_v11 = vstv %s357_s6  ;;  %v99_v14 = vmul.f32 %v98_v9, %v37_v0  ;;  %v101_v15 = vmul.f32 %v98_v9, %v39_v1  ;;  %p406_p11 = scmp.ne.s32.totalorder %s348_s16, %s405_s17  ;;  %p410_p12 = scmp.lt.s32.totalorder %s348_s16, %s348_s16 }
  0x27   :  { %v484_v12 = vstv %s359_s7  ;;  %v73_v16 = vmul.f32 %v72_v10, %v37_v0  ;;  %v75_v17 = vmul.f32 %v72_v10, %v39_v1  ;;  %v74_v24 = vmul.f32 %v72_v10, %v38_v2  ;;  %p411_p13 = scmp.lt.s32.totalorder %s409_s18, %s405_s17 }
  0x28   :  { %64 = vrot.lane.b32.xlu0 %v41_v4, %s437_s4  ;;  %66 = vrot.lane.b32.xlu1 %v42_v5, %s437_s4  ;;  %v100_v25 = vmul.f32 %v98_v9, %v38_v2  ;;  %v76_v26 = vmul.f32 %v72_v10, %v40_v3  ;;  %v102_v27 = vmul.f32 %v98_v9, %v40_v3  ;;  %s53_s12 = sadd.f32 %s362_s9, %s361_s8 }
  0x29   :  { %v77_v30 = vmul.f32 %v72_v10, %v41_v4  ;;  %v103_v31 = vmul.f32 %v98_v9, %v41_v4  ;;  %v78_v40 = vmul.f32 %v72_v10, %v42_v5  ;;  %v104_v41 = vmul.f32 %v98_v9, %v42_v5  ;;  %p412_p0 = por %p411_p13, %p410_p12 }
  0x2a   :  { %v79_v44 = vmul.f32 %v72_v10, %v43_v6  ;;  %v105_v48 = vmul.f32 %v98_v9, %v43_v6  ;;  %v80_v58 = vmul.f32 %v72_v10, %v479_v7  ;;  %v106_v62 = vmul.f32 %v98_v9, %v479_v7  ;;  %s54_s13 = smul.f32 %s360_s10, %s53_s12 }
  0x2b   :  { %p413_p1 = pnand %p412_p0, %p406_p11 }
  0x2c   :  { %68 = vrot.lane.b32.xlu0 %v43_v6, %s437_s4  ;;  %70 = vrot.lane.b32.xlu1 %v479_v7, %s437_s4  ;;  %s55_s14 = sadd.f32 %s363_s11, %s54_s13 }
  0x92   :  { %v57_v18 = vpop.permute.xlu0 %56  ;;  %v61_v19 = vpop.permute.xlu1 %60 }
  0x93   :  { %v82_v20 = vmul.f32 %v482_v11, %v57_v18  ;;  %v108_v21 = vmul.f32 %v484_v12, %v57_v18  ;;  %v84_v22 = vmul.f32 %v482_v11, %v61_v19  ;;  %v110_v23 = vmul.f32 %v484_v12, %v61_v19 }
  0x95   :  { %v116_v28 = vadd.f32 %v108_v21, %v99_v14  ;;  %v118_v29 = vadd.f32 %v110_v23, %v101_v15  ;;  %v90_v32 = vadd.f32 %v82_v20, %v73_v16  ;;  %v92_v33 = vadd.f32 %v84_v22, %v75_v17 }
  0x96   :  { %v59_v34 = vpop.permute.xlu0 %58  ;;  %v63_v35 = vpop.permute.xlu1 %62 }
  0x97   :  { %v124_v36 = vrot.slane %v116_v28, 1  ;;  %v126_v37 = vrot.slane %v118_v29, 1  ;;  %v83_v38 = vmul.f32 %v482_v11, %v59_v34  ;;  %v109_v39 = vmul.f32 %v484_v12, %v59_v34 }
  0x98   :  { %v85_v42 = vmul.f32 %v482_v11, %v63_v35  ;;  %v111_v43 = vmul.f32 %v484_v12, %v63_v35  ;;  %v524_v34 = vstv %s362_s9 }
  0x99   :  { %v91_v45 = vadd.f32 %v83_v38, %v74_v24  ;;  %v117_v46 = vadd.f32 %v109_v39, %v100_v25  ;;  %v132_v47 = vadd.f32 %v124_v36, %v90_v32  ;;  %v134_v53 = vadd.f32 %v126_v37, %v92_v33 }
  0x9a   :  { %v93_v49 = vadd.f32 %v85_v42, %v76_v26  ;;  %v119_v50 = vadd.f32 %v111_v43, %v102_v27  ;;  %v65_v51 = vpop.permute.xlu0 %64  ;;  %v67_v52 = vpop.permute.xlu1 %66  ;;  %v438_v32 = vmov 0   ;;  %v177_v33 = vstv %s361_s8 }
  0x9b   :  { %v125_v54 = vrot.slane %v117_v46, 1  ;;  %v86_v55 = vmul.f32 %v482_v11, %v65_v51  ;;  %v112_v56 = vmul.f32 %v484_v12, %v65_v51  ;;  %v145_v57 = vsel %vm142_vm0, %v132_v47, inf  ;;  %371 = vset.pattern.permute.xlu1 %v438_v32  ;;  %372 = vset.pattern.permute.xlu0 %v438_v32 }
  0x9c   :  { %v127_v59 = vrot.slane %v119_v50, 1  ;;  %153 = vmin.xlane.f32.xlu0 %v145_v57  ;;  %v87_v60 = vmul.f32 %v482_v11, %v67_v52  ;;  %v113_v61 = vmul.f32 %v484_v12, %v67_v52  ;;  %v147_v5 = vsel %vm142_vm0, %v134_v53, inf }
  0x9d   :  { %v94_v63 = vadd.f32 %v86_v55, %v77_v30  ;;  %v120_v0 = vadd.f32 %v112_v56, %v103_v31  ;;  %v133_v1 = vadd.f32 %v125_v54, %v91_v45  ;;  %v527_v37 = vshrl.u32 %v140_v8, 7 }
  0x9e   :  { %v95_v2 = vadd.f32 %v87_v60, %v78_v40  ;;  %v121_v3 = vadd.f32 %v113_v61, %v104_v41  ;;  %v69_v4 = vpop.permute.xlu0 %68  ;;  %v71_v6 = vpop.permute.xlu1 %70  ;;  %v135_v14 = vadd.f32 %v127_v59, %v93_v49  ;;  %v530_v40 = vstv %s55_s14 }
  0x9f   :  { %v128_v10 = vrot.slane %v120_v0, 1  ;;  %v88_v15 = vmul.f32 %v482_v11, %v69_v4  ;;  %v114_v16 = vmul.f32 %v484_v12, %v69_v4  ;;  %v146_v17 = vsel %vm142_vm0, %v133_v1, inf }
  0xa0   :  { %v129_v7 = vrot.slane %v121_v3, 1  ;;  %155 = vmin.xlane.f32.xlu1 %v146_v17  ;;  %157 = vmin.xlane.f32.xlu0 %v147_v5  ;;  %v89_v9 = vmul.f32 %v482_v11, %v71_v6  ;;  %v115_v18 = vmul.f32 %v484_v12, %v71_v6  ;;  %v148_v27 = vsel %vm142_vm0, %v135_v14, inf }
  0xa1   :  { %v96_v19 = vadd.f32 %v88_v15, %v79_v44  ;;  %v122_v20 = vadd.f32 %v114_v16, %v105_v48  ;;  %v136_v21 = vadd.f32 %v128_v10, %v94_v63  ;;  %vm214_vm1 = vcmp.lt.s32.totalorder %v527_v37, 6 }
  0xa2   :  { %v97_v22 = vadd.f32 %v89_v9, %v80_v58  ;;  %v123_v23 = vadd.f32 %v115_v18, %v106_v62  ;;  %v137_v24 = vadd.f32 %v129_v7, %v95_v2  ;;  %vm282_vm10 = vcmp.eq.s32.totalorder %v527_v37, %v487_v13 }
  0xa3   :  { %v130_v25 = vrot.slane %v122_v20, 1  ;;  %v149_v26 = vsel %vm142_vm0, %v136_v21, inf }
  0xa4   :  { %v131_v28 = vrot.slane %v123_v23, 1  ;;  %161 = vmin.xlane.f32.xlu1 %v149_v26  ;;  %159 = vmin.xlane.f32.xlu0 %v148_v27  ;;  %v150_v11 = vsel %vm142_vm0, %v137_v24, inf }
  0xa5   :  { %v138_v29 = vadd.f32 %v130_v25, %v96_v19 }
  0xa6   :  { %v139_v12 = vadd.f32 %v131_v28, %v97_v22 }
  0xa7   :  { %v151_v30 = vsel %vm142_vm0, %v138_v29, inf }
  0xa8   :  { %165 = vmin.xlane.f32.xlu1 %v151_v30  ;;  %163 = vmin.xlane.f32.xlu0 %v150_v11  ;;  %v152_v31 = vsel %vm142_vm0, %v139_v12, inf }
  0xac   :  { %167 = vmin.xlane.f32.xlu0 %v152_v31 }
 0x129   :  { %v154_v35 = vpop.xlane.xlu0 %153 }
 0x12a   :  { %v169_v36 = vrot.slane %v154_v35, 1  ;;  %v178_v38 = vmul.f32 %v177_v33, %v154_v35 }
 0x12c   :  { %v187_v39 = vmul.f32 %v524_v34, %v169_v36 }
 0x12d   :  { %v156_v41 = vpop.xlane.xlu1 %155  ;;  %v158_v42 = vpop.xlane.xlu0 %157 }
 0x12e   :  { %v195_v43 = vadd.f32 %v187_v39, %v178_v38  ;;  %v170_v44 = vrot.slane %v156_v41, 1  ;;  %v179_v45 = vmul.f32 %v177_v33, %v156_v41  ;;  %v171_v46 = vrot.slane %v158_v42, 1 }
 0x12f   :  { %v180_v8 = vmul.f32 %v177_v33, %v158_v42 }
 0x130   :  { %v204_v47 = vadd.f32 %v530_v40, %v195_v43  ;;  %v188_v48 = vmul.f32 %v524_v34, %v170_v44  ;;  %v189_v49 = vmul.f32 %v524_v34, %v171_v46 }
 0x131   :  { %v162_v50 = vpop.xlane.xlu1 %161  ;;  %v160_v51 = vpop.xlane.xlu0 %159 }
 0x132   :  { %v217_v52 = vsel %vm214_vm1, %v204_v47, -inf  ;;  %v196_v53 = vadd.f32 %v188_v48, %v179_v45  ;;  %v197_v54 = vadd.f32 %v189_v49, %v180_v8  ;;  %v173_v55 = vrot.slane %v162_v50, 1 }
 0x133   :  { %v226_v56 = vsel %vm225_vm2, %v217_v52, -inf  ;;  %v182_v57 = vmul.f32 %v177_v33, %v162_v50  ;;  %v172_v58 = vrot.slane %v160_v51, 1  ;;  %v181_v63 = vmul.f32 %v177_v33, %v160_v51 }
 0x134   :  { %v205_v59 = vadd.f32 %v530_v40, %v196_v53  ;;  %v206_v60 = vadd.f32 %v530_v40, %v197_v54  ;;  %v191_v61 = vmul.f32 %v524_v34, %v173_v55  ;;  %v227_v62 = vrot.slane %v226_v56, 4 }
 0x135   :  { %v190_v0 = vmul.f32 %v524_v34, %v172_v58  ;;  %v166_v1 = vpop.xlane.xlu1 %165  ;;  %v164_v2 = vpop.xlane.xlu0 %163 }
 0x136   :  { %v218_v3 = vsel %vm214_vm1, %v205_v59, -inf  ;;  %v219_v4 = vsel %vm214_vm1, %v206_v60, -inf  ;;  %v199_v5 = vadd.f32 %v191_v61, %v182_v57  ;;  %v175_v6 = vrot.slane %v166_v1, 1 }
 0x137   :  { %v233_v14 = vsel %vm225_vm2, %v218_v3, -inf  ;;  %v240_v10 = vsel %vm225_vm2, %v219_v4, -inf  ;;  %v198_v15 = vadd.f32 %v190_v0, %v181_v63  ;;  %v184_v16 = vmul.f32 %v177_v33, %v166_v1 }
 0x138   :  { %v234_v17 = vrot.slane %v233_v14, 4  ;;  %v241_v7 = vrot.slane %v240_v10, 4  ;;  %v208_v9 = vadd.f32 %v530_v40, %v199_v5  ;;  %v193_v18 = vmul.f32 %v524_v34, %v175_v6 }
 0x139   :  { %v207_v19 = vadd.f32 %v530_v40, %v198_v15  ;;  %v174_v20 = vrot.slane %v164_v2, 1  ;;  %v183_v21 = vmul.f32 %v177_v33, %v164_v2  ;;  %v168_v22 = vpop.xlane.xlu0 %167  ;;  %v228_v23 = vmax.f32 %v226_v56, %v227_v62 }
 0x13a   :  { %v221_v24 = vsel %vm214_vm1, %v208_v9, -inf  ;;  %v201_v25 = vadd.f32 %v193_v18, %v184_v16  ;;  %v176_v26 = vrot.slane %v168_v22, 1  ;;  %v185_v27 = vmul.f32 %v177_v33, %v168_v22 }
 0x13b   :  { %v254_v28 = vsel %vm225_vm2, %v221_v24, -inf  ;;  %v220_v29 = vsel %vm214_vm1, %v207_v19, -inf  ;;  %v192_v11 = vmul.f32 %v524_v34, %v174_v20  ;;  %v229_v12 = vrot.slane %v228_v23, 2 }
 0x13c   :  { %v255_v30 = vrot.slane %v254_v28, 4  ;;  %v247_v31 = vsel %vm225_vm2, %v220_v29, -inf  ;;  %v210_v32 = vadd.f32 %v530_v40, %v201_v25  ;;  %v194_v35 = vmul.f32 %v524_v34, %v176_v26 }
 0x13d   :  { %v248_v36 = vrot.slane %v247_v31, 4  ;;  %v200_v38 = vadd.f32 %v192_v11, %v183_v21  ;;  %v230_v39 = vmax.f32 %v228_v23, %v229_v12  ;;  %v235_v41 = vmax.f32 %v233_v14, %v234_v17 }
 0x13e   :  { %v223_v33 = vsel %vm214_vm1, %v210_v32, -inf  ;;  %v202_v42 = vadd.f32 %v194_v35, %v185_v27  ;;  %v242_v43 = vmax.f32 %v240_v10, %v241_v7  ;;  %v256_v44 = vmax.f32 %v254_v28, %v255_v30 }
 0x13f   :  { %v268_v45 = vsel %vm225_vm2, %v223_v33, -inf  ;;  %v209_v46 = vadd.f32 %v530_v40, %v200_v38  ;;  %v231_v47 = vrot.slane %v230_v39, 1  ;;  %v236_v48 = vrot.slane %v235_v41, 2 }
 0x140   :  { %v269_v8 = vrot.slane %v268_v45, 4  ;;  %v211_v49 = vadd.f32 %v530_v40, %v202_v42  ;;  %v243_v34 = vrot.slane %v242_v43, 2  ;;  %v249_v50 = vmax.f32 %v247_v31, %v248_v36 }
 0x141   :  { %v222_v51 = vsel %vm214_vm1, %v209_v46, -inf  ;;  %v232_v52 = vmax.f32 %v230_v39, %v231_v47  ;;  %v237_v53 = vmax.f32 %v235_v41, %v236_v48  ;;  %v257_v54 = vrot.slane %v256_v44, 2 }
 0x142   :  { %v261_v55 = vsel %vm225_vm2, %v222_v51, -inf  ;;  %v224_v56 = vsel %vm214_vm1, %v211_v49, -inf  ;;  %v244_v57 = vmax.f32 %v242_v43, %v243_v34  ;;  %v250_v58 = vrot.slane %v249_v50, 2 }
 0x143   :  { %v262_v59 = vrot.slane %v261_v55, 4  ;;  %v275_v60 = vsel %vm225_vm2, %v224_v56, -inf  ;;  %285 = vperm.xlu1 %371, %v232_v52   ;;  %v238_v40 = vrot.slane %v237_v53, 1  ;;  %v258_v0 = vmax.f32 %v256_v44, %v257_v54 }
 0x144   :  { %v245_v61 = vrot.slane %v244_v57, 1  ;;  %v251_v62 = vmax.f32 %v249_v50, %v250_v58  ;;  %v276_v2 = vrot.slane %v275_v60, 4  ;;  %v270_v5 = vmax.f32 %v268_v45, %v269_v8 }
 0x145   :  { %v239_v63 = vmax.f32 %v237_v53, %v238_v40  ;;  %v263_v1 = vmax.f32 %v261_v55, %v262_v59  ;;  %v259_v10 = vrot.slane %v258_v0, 1 }
 0x146   :  { %v246_v3 = vmax.f32 %v244_v57, %v245_v61  ;;  %v252_v4 = vrot.slane %v251_v62, 1  ;;  %v271_v16 = vrot.slane %v270_v5, 2  ;;  %v277_v17 = vmax.f32 %v275_v60, %v276_v2 }
 0x147   :  { %289 = vperm.xlu0 %372, %v239_v63   ;;  %v264_v6 = vrot.slane %v263_v1, 2  ;;  %v260_v7 = vmax.f32 %v258_v0, %v259_v10 }
 0x148   :  { %293 = vperm.xlu1 %371, %v246_v3   ;;  %v253_v14 = vmax.f32 %v251_v62, %v252_v4  ;;  %v272_v18 = vmax.f32 %v270_v5, %v271_v16  ;;  %v278_v19 = vrot.slane %v277_v17, 2 }
 0x149   :  { %v265_v15 = vmax.f32 %v263_v1, %v264_v6 }
 0x14a   :  { %v273_v21 = vrot.slane %v272_v18, 1  ;;  %v279_v22 = vmax.f32 %v277_v17, %v278_v19 }
 0x14b   :  { %v266_v9 = vrot.slane %v265_v15, 1 }
 0x14c   :  { %297 = vperm.xlu1 %371, %v253_v14   ;;  %v274_v23 = vmax.f32 %v272_v18, %v273_v21  ;;  %v280_v24 = vrot.slane %v279_v22, 1 }
 0x14d   :  { %v267_v20 = vmax.f32 %v265_v15, %v266_v9 }
 0x14e   :  { %v281_v25 = vmax.f32 %v279_v22, %v280_v24 }
 0x150   :  { %301 = vperm.xlu1 %371, %v260_v7  }
 0x154   :  { %305 = vperm.xlu1 %371, %v267_v20  }
 0x158   :  { %309 = vperm.xlu1 %371, %v274_v23  }
 0x15c   :  { %313 = vperm.xlu1 %371, %v281_v25  }
 0x1c2   :  { %v286_v26 = vpop.permute.xlu1 %285 }
 0x1c6   :  { %v290_v11 = vpop.permute.xlu0 %289 }
 0x1c7   :  { %v294_v27 = vpop.permute.xlu1 %293  ;;  %v316_v30 = vsel %vm315_vm3, %v290_v11, %v286_v26 }
 0x1c8   :  { %v318_v31 = vsel %vm317_vm4, %v294_v27, %v316_v30 }
 0x1cb   :  { %v298_v28 = vpop.permute.xlu1 %297 }
 0x1cc   :  { %v320_v35 = vsel %vm319_vm5, %v298_v28, %v318_v31 }
 0x1cf   :  { %v302_v29 = vpop.permute.xlu1 %301 }
 0x1d0   :  { %v322_v36 = vsel %vm321_vm6, %v302_v29, %v320_v35 }
 0x1d3   :  { %v306_v12 = vpop.permute.xlu1 %305 }
 0x1d4   :  { %v324_v38 = vsel %vm323_vm7, %v306_v12, %v322_v36 }
 0x1d7   :  { %v310_v32 = vpop.permute.xlu1 %309 }
 0x1d8   :  { %v326_v39 = vsel %vm325_vm8, %v310_v32, %v324_v38 }
 0x1db   :  { %v314_v41 = vpop.permute.xlu1 %313 }
 0x1dc   :  { %v328_v33 = vsel %vm327_vm9, %v314_v41, %v326_v39 }
 0x1dd   :  { %v330_v42 = vsel %vm282_vm10, %v328_v33, 0.0 }
 0x1de   :  { %v332_v43 = vsel %vm331_vm11, %v330_v42, 0.0 }
 0x1df   :  { %v333_v44 = vrot.slane %v332_v43, 4 }
 0x1e1   :  { %v334_v45 = vadd.f32 %v333_v44, %v332_v43 }
 0x1e3   :  { %v335_v46 = vrot.slane %v334_v45, 2 }
 0x1e5   :  { %v336_v47 = vadd.f32 %v335_v46, %v334_v45 }
 0x1e7   :  { %v337_v48 = vrot.slane %v336_v47, 1 }
 0x1e9   :  { %v338_v8 = vadd.f32 %v337_v48, %v336_v47 }
 0x1eb   :  { %340 = vst.msk [vmem:[#allocation7] sm:$0x1] %vm339_vm12, %v338_v8 }
 0x1ec   :  { %416 = shalt.err (!%p413_p1)
}
 0x1ed   :  { %s417_s21 = scalar_lea.hbm %s588_s2, 16 }
 0x1ee   :  { %p418_p2 = scmp.ne.s32.totalorder %s588_s2, %s417_s21  ;;  %p421_p3 = scmp.lt.u32.totalorder %s417_s21, %s588_s2 }
 0x1f0   :  { %p423_p4 = pnand %p421_p3, %p418_p2 }
 0x1f2   :  { %426 = shalt.err (!%p423_p4)
}
 0x1f3   :  { %350 = dma.vmem_to_hbm [thread:$0]  %s348_s16, 16, %s588_s2, [#allocation4]  }
 0x1f4   :  { %431 = dma.done.wait [#allocation4], 16  }
 0x1f5   :  { %432 = vsyncadd [#allocation4], 4294967280 }
 0x1f6   :  { %354 = vsyncpa [#allocation3], 1 }
 0x1f7   :  { %355 = vsyncpa [#allocation4], 1 }
 0x1f8   :  { %356 = vsyncpa [#allocation5], 1 }

</bundles_post_ra>
